<compile_context>
chip_gen: v5e
topology: v5e:2x2
jax: 0.10.0
libtpu: 0.0.40
codegen_flags: <defaults>
</compile_context>

<pallas_src>
import functools

import jax
import jax.numpy as jnp
from jax.experimental import pallas as pl
from jax.experimental.pallas import tpu as pltpu

_SUBLANE = 8
_TILE_VMEM_BUDGET = 16 * 1024 * 1024   # budget for per-step blocks (safe on v5e)


def _round_up(v, m):
    return ((v + m - 1) // m) * m


def mlp_kernel(x_ref,
               w1_ref, b1_ref,
               w2_ref, b2_ref,
               w3_ref, b3_ref,
               w4_ref, b4_ref,
               o_ref):
    # Compute dtype for MXU operands (bf16 by default); accumulation, bias add
    # and ReLU are f32 via preferred_element_type.
    cdt = w1_ref.dtype
    h = x_ref[...].astype(cdt)
    # fc1 + relu
    h = jnp.dot(h, w1_ref[...], preferred_element_type=jnp.float32)
    h = jnp.maximum(h + b1_ref[...], 0.0)
    # fc2 + relu
    h = jnp.dot(h.astype(cdt), w2_ref[...], preferred_element_type=jnp.float32)
    h = jnp.maximum(h + b2_ref[...], 0.0)
    # fc3 + relu
    h = jnp.dot(h.astype(cdt), w3_ref[...], preferred_element_type=jnp.float32)
    h = jnp.maximum(h + b3_ref[...], 0.0)
    # fc4 (no activation)
    h = jnp.dot(h.astype(cdt), w4_ref[...], preferred_element_type=jnp.float32)
    o_ref[...] = (h + b4_ref[...]).astype(o_ref.dtype)


def _resident_spec(arr):
    """Full-array block that stays at block (0, ..., 0) for every grid step."""
    ndim = arr.ndim
    return pl.BlockSpec(arr.shape, lambda i, _n=ndim: (0,) * _n)


def _pick_batch_tile(B, per_row_vmem_bytes, batch_tile, vmem_budget_bytes):
    """Pick a batch tile (multiple of 8 sublanes) from a VMEM budget.

    Aims for >= 2 grid blocks when B allows it so v7x's second TensorCore is
    used; harmless on the single-core v5e/v6e.
    """
    if B > batch_tile:
        tb = batch_tile
    else:
        tb = max(_SUBLANE, _round_up(pl.cdiv(B, 2), _SUBLANE))
        tb = min(tb, _round_up(B, _SUBLANE))
    while tb > _SUBLANE and tb * per_row_vmem_bytes > vmem_budget_bytes:
        tb = max(_SUBLANE, _round_up(tb // 2, _SUBLANE))
    return tb


@functools.partial(jax.jit, static_argnames=("batch_tile",))
def neural_net_forward(x, params, *, batch_tile=512):
    """x: (B, input_size) f32.  params: dict of W^T (in, out) and b (1, out)."""
    B, input_size = x.shape
    h1 = params["w1"].shape[1]
    h2 = params["w2"].shape[1]
    h3 = params["w3"].shape[1]
    num_outputs = params["w4"].shape[1]

    args = (x,
            params["w1"], params["b1"],
            params["w2"], params["b2"],
            params["w3"], params["b3"],
            params["w4"], params["b4"])

    # --- size the batch tile from a VMEM budget -----------------------------
    c_item = jnp.dtype(params["w1"].dtype).itemsize
    per_row = (2 * input_size * 4              # x block, double-buffered, f32
               + 2 * num_outputs * 4           # out block, double-buffered, f32
               + 4 * (h1 + h2 + h3)            # f32 intermediate activations
               + c_item * (input_size + h1 + h2 + h3))  # compute-dtype copies
    tb = _pick_batch_tile(B, per_row, batch_tile, _TILE_VMEM_BUDGET)
    num_blocks = pl.cdiv(B, tb)                # no jnp.pad of x: partial last
                                               # block handled by Pallas

    w_bytes = 2 * sum(int(a.size) * jnp.dtype(a.dtype).itemsize
                      for a in args[1:])       # double-buffered resident params
    est_vmem = tb * per_row + w_bytes
    vmem_limit = int(min(64 << 20, max(32 << 20, 4 * est_vmem)))

    in_specs = [pl.BlockSpec((tb, input_size), lambda i: (i, 0))]
    in_specs += [_resident_spec(a) for a in args[1:]]
    # Full last dim == num_outputs (no 128-lane pad, no wrapper slice).
    out_spec = pl.BlockSpec((tb, num_outputs), lambda i: (i, 0))

    flops = 2 * B * (input_size * h1 + h1 * h2 + h2 * h3 + h3 * num_outputs)
    bytes_accessed = (int(x.size) * 4
                      + sum(int(a.size) * jnp.dtype(a.dtype).itemsize
                            for a in args[1:])
                      + B * num_outputs * 4)

    return pl.pallas_call(
        mlp_kernel,
        out_shape=jax.ShapeDtypeStruct((B, num_outputs), jnp.float32),
        grid=(num_blocks,),
        in_specs=in_specs,
        out_specs=out_spec,
        compiler_params=pltpu.CompilerParams(
            dimension_semantics=("parallel",),
            vmem_limit_bytes=vmem_limit),
        cost_estimate=pl.CostEstimate(flops=flops,
                                      transcendentals=0,
                                      bytes_accessed=bytes_accessed),
    )(*args)


def init_params(key, input_size, hidden_size, hidden_size2, hidden_size3,
                num_outputs):
    """Init mimicking nn.Linear's U(-1/sqrt(fan_in), 1/sqrt(fan_in)).

    Weights stored transposed: (in_features, out_features).
    Biases stored as (1, out_features) for clean 2-D broadcasting in-kernel.
    """
    sizes = [(input_size, hidden_size),
             (hidden_size, hidden_size2),
             (hidden_size2, hidden_size3),
             (hidden_size3, num_outputs)]
    params = {}
    keys = jax.random.split(key, 2 * len(sizes))
    for i, (fan_in, fan_out) in enumerate(sizes):
        bound = 1.0 / jnp.sqrt(jnp.float32(fan_in))
        w = jax.random.uniform(keys[2 * i], (fan_in, fan_out),
                               minval=-bound, maxval=bound, dtype=jnp.float32)
        b = jax.random.uniform(keys[2 * i + 1], (1, fan_out),
                               minval=-bound, maxval=bound, dtype=jnp.float32)
        params[f"w{i + 1}"] = w
        params[f"b{i + 1}"] = b
    return params


def prepare_params(params, compute_dtype=jnp.bfloat16):
    """One-time param prep (hoisted out of the jitted forward).

    Casts weights to the MXU compute dtype (bf16 halves weight HBM traffic and
    uses the native bf16 MXU rate on v6e/v7x); biases stay f32.
    """
    prepared = {}
    for i in range(1, 5):
        prepared[f"w{i}"] = params[f"w{i}"].astype(compute_dtype)
        prepared[f"b{i}"] = params[f"b{i}"].astype(jnp.float32)
    return jax.tree_util.tree_map(jax.block_until_ready, prepared)


def _reference(x, params):
    f32 = jnp.float32
    h = jnp.maximum(x @ params["w1"].astype(f32) + params["b1"], 0.0)
    h = jnp.maximum(h @ params["w2"].astype(f32) + params["b2"], 0.0)
    h = jnp.maximum(h @ params["w3"].astype(f32) + params["b3"], 0.0)
    return h @ params["w4"].astype(f32) + params["b4"]


if __name__ == "__main__":
    # Small shapes consistent with the module's forward.
    input_size, hidden_size, hidden_size2, hidden_size3, num_outputs = 16, 32, 64, 32, 8

    key = jax.random.PRNGKey(0)
    k_x, k_p = jax.random.split(key)
    raw_params = init_params(k_p, input_size, hidden_size, hidden_size2,
                             hidden_size3, num_outputs)

    ok = True
    # Exercise both the f32 (exact-semantics) and bf16 (default, reduced HBM
    # traffic) parameter paths, and batches that hit: multi-block even split
    # (256), a partial last block with no padding copies (20), and a single
    # tiny block (8).
    for compute_dtype, tol in ((jnp.float32, 1e-5), (jnp.bfloat16, 3e-2)):
        params = prepare_params(raw_params, compute_dtype)
        for batch in (256, 20, 8):
            x = jax.random.normal(jax.random.fold_in(k_x, batch),
                                  (batch, input_size), dtype=jnp.float32)
            out = neural_net_forward(x, params)
            jax.block_until_ready(out)
            ref = _reference(x, params)
            ok &= out.shape == (batch, num_outputs)
            ok &= bool(jnp.allclose(out, ref, atol=tol, rtol=tol))

    assert ok
    print("KERNEL_OK")
</pallas_src>

<mosaic_0001>
module attributes {stable_mosaic.version = 11 : i64} {
  func.func @mlp_kernel(%arg0: i32, %arg1: memref<128x16xf32, #tpu.memory_space<vmem>>, %arg2: memref<16x32xf32, #tpu.memory_space<vmem>>, %arg3: memref<1x32xf32, #tpu.memory_space<vmem>>, %arg4: memref<32x64xf32, #tpu.memory_space<vmem>>, %arg5: memref<1x64xf32, #tpu.memory_space<vmem>>, %arg6: memref<64x32xf32, #tpu.memory_space<vmem>>, %arg7: memref<1x32xf32, #tpu.memory_space<vmem>>, %arg8: memref<32x8xf32, #tpu.memory_space<vmem>>, %arg9: memref<1x8xf32, #tpu.memory_space<vmem>>, %arg10: memref<128x8xf32, #tpu.memory_space<vmem>>) attributes {dimension_semantics = [#tpu.dimension_semantics<parallel>], iteration_bounds = array<i64: 2>, scalar_prefetch = 0 : i64, scratch_operands = 0 : i64, tpu.core_type = #tpu.core_type<tc>, window_params = [{transform_indices = @transform_0, window_bounds = array<i64: 128, 16>}, {pipeline_mode = #tpu.pipeline_mode<synchronous>, transform_indices = @transform_1, window_bounds = array<i64: 16, 32>}, {pipeline_mode = #tpu.pipeline_mode<synchronous>, transform_indices = @transform_2, window_bounds = array<i64: 1, 32>}, {pipeline_mode = #tpu.pipeline_mode<synchronous>, transform_indices = @transform_3, window_bounds = array<i64: 32, 64>}, {pipeline_mode = #tpu.pipeline_mode<synchronous>, transform_indices = @transform_4, window_bounds = array<i64: 1, 64>}, {pipeline_mode = #tpu.pipeline_mode<synchronous>, transform_indices = @transform_5, window_bounds = array<i64: 64, 32>}, {pipeline_mode = #tpu.pipeline_mode<synchronous>, transform_indices = @transform_6, window_bounds = array<i64: 1, 32>}, {pipeline_mode = #tpu.pipeline_mode<synchronous>, transform_indices = @transform_7, window_bounds = array<i64: 32, 8>}, {pipeline_mode = #tpu.pipeline_mode<synchronous>, transform_indices = @transform_8, window_bounds = array<i64: 1, 8>}, {transform_indices = @transform_9, window_bounds = array<i64: 128, 8>}]} {
    %c0 = arith.constant 0 : index
    %c0_0 = arith.constant 0 : index
    %0 = vector.load %arg1[%c0, %c0_0] : memref<128x16xf32, #tpu.memory_space<vmem>>, vector<128x16xf32>
    %c0_1 = arith.constant 0 : index
    %c0_2 = arith.constant 0 : index
    %1 = vector.load %arg2[%c0_1, %c0_2] : memref<16x32xf32, #tpu.memory_space<vmem>>, vector<16x32xf32>
    %cst = arith.constant dense<0.000000e+00> : vector<128x32xf32>
    %2 = tpu.matmul %0, %1, %cst {dimension_numbers = #tpu.dot_dimension_numbers<[1], [0], [0], [1], [0, 0, 1, 1], [], []>} : vector<128x16xf32>, vector<16x32xf32>, vector<128x32xf32> -> vector<128x32xf32>
    %c0_3 = arith.constant 0 : index
    %c0_4 = arith.constant 0 : index
    %3 = vector.load %arg3[%c0_3, %c0_4] : memref<1x32xf32, #tpu.memory_space<vmem>>, vector<1x32xf32>
    %4 = vector.broadcast %3 : vector<1x32xf32> to vector<128x32xf32>
    %5 = arith.addf %2, %4 : vector<128x32xf32>
    %cst_5 = arith.constant 0.000000e+00 : f32
    %6 = vector.broadcast %cst_5 : f32 to vector<128x32xf32>
    %7 = arith.maximumf %5, %6 : vector<128x32xf32>
    %c0_6 = arith.constant 0 : index
    %c0_7 = arith.constant 0 : index
    %8 = vector.load %arg4[%c0_6, %c0_7] : memref<32x64xf32, #tpu.memory_space<vmem>>, vector<32x64xf32>
    %cst_8 = arith.constant dense<0.000000e+00> : vector<128x64xf32>
    %9 = tpu.matmul %7, %8, %cst_8 {dimension_numbers = #tpu.dot_dimension_numbers<[1], [0], [0], [1], [0, 0, 1, 1], [], []>} : vector<128x32xf32>, vector<32x64xf32>, vector<128x64xf32> -> vector<128x64xf32>
    %c0_9 = arith.constant 0 : index
    %c0_10 = arith.constant 0 : index
    %10 = vector.load %arg5[%c0_9, %c0_10] : memref<1x64xf32, #tpu.memory_space<vmem>>, vector<1x64xf32>
    %11 = vector.broadcast %10 : vector<1x64xf32> to vector<128x64xf32>
    %12 = arith.addf %9, %11 : vector<128x64xf32>
    %cst_11 = arith.constant 0.000000e+00 : f32
    %13 = vector.broadcast %cst_11 : f32 to vector<128x64xf32>
    %14 = arith.maximumf %12, %13 : vector<128x64xf32>
    %c0_12 = arith.constant 0 : index
    %c0_13 = arith.constant 0 : index
    %15 = vector.load %arg6[%c0_12, %c0_13] : memref<64x32xf32, #tpu.memory_space<vmem>>, vector<64x32xf32>
    %cst_14 = arith.constant dense<0.000000e+00> : vector<128x32xf32>
    %16 = tpu.matmul %14, %15, %cst_14 {dimension_numbers = #tpu.dot_dimension_numbers<[1], [0], [0], [1], [0, 0, 1, 1], [], []>} : vector<128x64xf32>, vector<64x32xf32>, vector<128x32xf32> -> vector<128x32xf32>
    %c0_15 = arith.constant 0 : index
    %c0_16 = arith.constant 0 : index
    %17 = vector.load %arg7[%c0_15, %c0_16] : memref<1x32xf32, #tpu.memory_space<vmem>>, vector<1x32xf32>
    %18 = vector.broadcast %17 : vector<1x32xf32> to vector<128x32xf32>
    %19 = arith.addf %16, %18 : vector<128x32xf32>
    %cst_17 = arith.constant 0.000000e+00 : f32
    %20 = vector.broadcast %cst_17 : f32 to vector<128x32xf32>
    %21 = arith.maximumf %19, %20 : vector<128x32xf32>
    %c0_18 = arith.constant 0 : index
    %c0_19 = arith.constant 0 : index
    %22 = vector.load %arg8[%c0_18, %c0_19] : memref<32x8xf32, #tpu.memory_space<vmem>>, vector<32x8xf32>
    %cst_20 = arith.constant dense<0.000000e+00> : vector<128x8xf32>
    %23 = tpu.matmul %21, %22, %cst_20 {dimension_numbers = #tpu.dot_dimension_numbers<[1], [0], [0], [1], [0, 0, 1, 1], [], []>} : vector<128x32xf32>, vector<32x8xf32>, vector<128x8xf32> -> vector<128x8xf32>
    %c0_21 = arith.constant 0 : index
    %c0_22 = arith.constant 0 : index
    %24 = vector.load %arg9[%c0_21, %c0_22] : memref<1x8xf32, #tpu.memory_space<vmem>>, vector<1x8xf32>
    %25 = vector.broadcast %24 : vector<1x8xf32> to vector<128x8xf32>
    %26 = arith.addf %23, %25 : vector<128x8xf32>
    %c0_23 = arith.constant 0 : index
    %c0_24 = arith.constant 0 : index
    %27 = vector.load %arg10[%c0_23, %c0_24] : memref<128x8xf32, #tpu.memory_space<vmem>>, vector<128x8xf32>
    tpu.vector_store %arg10[%c0_23, %c0_24], %26 {strides = array<i32>} : memref<128x8xf32, #tpu.memory_space<vmem>>, vector<128x8xf32>,
    return
  }
  func.func @transform_0(%arg0: i32) -> (i32, i32) {
    %c0_i32 = arith.constant 0 : i32
    %c0_i32_0 = arith.constant 0 : i32
    return %arg0, %c0_i32 : i32, i32
  }
  func.func @transform_1(%arg0: i32) -> (i32, i32) {
    %c0_i32 = arith.constant 0 : i32
    %c0_i32_0 = arith.constant 0 : i32
    %c0_i32_1 = arith.constant 0 : i32
    return %c0_i32, %c0_i32_0 : i32, i32
  }
  func.func @transform_2(%arg0: i32) -> (i32, i32) {
    %c0_i32 = arith.constant 0 : i32
    %c0_i32_0 = arith.constant 0 : i32
    %c0_i32_1 = arith.constant 0 : i32
    return %c0_i32, %c0_i32_0 : i32, i32
  }
  func.func @transform_3(%arg0: i32) -> (i32, i32) {
    %c0_i32 = arith.constant 0 : i32
    %c0_i32_0 = arith.constant 0 : i32
    %c0_i32_1 = arith.constant 0 : i32
    return %c0_i32, %c0_i32_0 : i32, i32
  }
  func.func @transform_4(%arg0: i32) -> (i32, i32) {
    %c0_i32 = arith.constant 0 : i32
    %c0_i32_0 = arith.constant 0 : i32
    %c0_i32_1 = arith.constant 0 : i32
    return %c0_i32, %c0_i32_0 : i32, i32
  }
  func.func @transform_5(%arg0: i32) -> (i32, i32) {
    %c0_i32 = arith.constant 0 : i32
    %c0_i32_0 = arith.constant 0 : i32
    %c0_i32_1 = arith.constant 0 : i32
    return %c0_i32, %c0_i32_0 : i32, i32
  }
  func.func @transform_6(%arg0: i32) -> (i32, i32) {
    %c0_i32 = arith.constant 0 : i32
    %c0_i32_0 = arith.constant 0 : i32
    %c0_i32_1 = arith.constant 0 : i32
    return %c0_i32, %c0_i32_0 : i32, i32
  }
  func.func @transform_7(%arg0: i32) -> (i32, i32) {
    %c0_i32 = arith.constant 0 : i32
    %c0_i32_0 = arith.constant 0 : i32
    %c0_i32_1 = arith.constant 0 : i32
    return %c0_i32, %c0_i32_0 : i32, i32
  }
  func.func @transform_8(%arg0: i32) -> (i32, i32) {
    %c0_i32 = arith.constant 0 : i32
    %c0_i32_0 = arith.constant 0 : i32
    %c0_i32_1 = arith.constant 0 : i32
    return %c0_i32, %c0_i32_0 : i32, i32
  }
  func.func @transform_9(%arg0: i32) -> (i32, i32) {
    %c0_i32 = arith.constant 0 : i32
    %c0_i32_0 = arith.constant 0 : i32
    return %arg0, %c0_i32 : i32, i32
  }
}

</mosaic_0001>

<bundles_post_ra>
// kernel: neural_net_forward.1
= control target key start
LH: loop header
LB: loop body
LE: loop exit
PB: predicated region body
PF: predicated region fallthrough
CT: control target
= control target key end

     0   :  { %s1107_s30 = smov 0   ;;  %s1349_s0 = inlined_call_operand.vmem [shape: f32[256,16], index: 0, kind: input, shape index: {}]   ;;  %s1350_s1 = inlined_call_operand.vmem [shape: f32[16,32], index: 1, kind: input, shape index: {}]   ;;  %s1351_s2 = inlined_call_operand.vmem [shape: f32[1,32], index: 2, kind: input, shape index: {}]   ;;  %s1352_s3 = inlined_call_operand.vmem [shape: f32[32,64], index: 3, kind: input, shape index: {}]   ;;  %s1353_s4 = inlined_call_operand.vmem [shape: f32[1,64], index: 4, kind: input, shape index: {}]   ;;  %s1354_s5 = inlined_call_operand.vmem [shape: f32[64,32], index: 5, kind: input, shape index: {}]   ;;  %s1355_s6 = inlined_call_operand.vmem [shape: f32[1,32], index: 6, kind: input, shape index: {}]   ;;  %s1356_s7 = inlined_call_operand.vmem [shape: f32[32,8], index: 7, kind: input, shape index: {}]   ;;  %s1357_s8 = inlined_call_operand.vmem [shape: f32[1,8], index: 8, kind: input, shape index: {}]   ;;  %s1358_s9 = inlined_call_operand.vmem [shape: f32[256,8], index: 9, kind: output, shape index: {}]  }
   0x1 LB: > { %s962_s10 = sadd.s32 4294967295, %s1055_s30   ;;  %p966_p0 = scmp.ge.s32.totalorder %s1055_s30, 1  ;;  %s1055_s30 = sphi %s1107_s30, %s19_s30  }
   0x2   : > { %p288_p1 = scmp.lt.s32.totalorder %s1055_s30, 3 }
   0x4   : > { %p289_p2 = pnand %p966_p0, %p288_p1 }
   0x5   : > { %s967_s15 = sshll.u32 (!%p289_p2), %s962_s10, 4 }
   0x6   : > { %292 = sbr.rel (%p289_p2) target bundleno = 666 (0x29a), region = 56  ;;  %p325_p3 = scmp.lt.s32.totalorder (!%p289_p2), %s967_s15, 31 }
   0xb   : > { %v353_v0 = vld [vmem:[%s1350_s1 + $0x8] sm:$0xff]  ;;  %v352_v1 = vld [vmem:[%s1350_s1] sm:$0xff]  ;;  %s1360_s15 = smov (!%p325_p3, %s967_s15), 31  ;;  %vm358_vm0 = vcmask 130048   ;;  %v491_v14 = vld [vmem:[%s1352_s3 + $0x18] sm:$0xff]  ;;  %vm496_vm1 = vcmask 261120  }
   0xc   : > { %421 = vmatpush.msra.mxu0 %v353_v0  ;;  %s968_s16 = sshll.u32 %s1360_s15, 3  ;;  %557 = vmatpush.msra.mxu1 %v491_v14  ;;  %v490_v15 = vld [vmem:[%s1352_s3 + $0x10] sm:$0xff]  ;;  %v489_v17 = vld [vmem:[%s1352_s3 + $0x8] sm:$0xff]  ;;  %v488_v18 = vld [vmem:[%s1352_s3] sm:$0xff]  ;;  %vm638_vm2 = vcmask 523264   ;;  %vm889_vm3 = vcmask 64512  }
   0xd   : > { %s1129_s19 = scalar_lea.vmem %s1349_s0, %s968_s16  ;;  %v1178_v22 = vld [vmem:[%s1351_s2] ss:$0 sm:$0xff]  ;;  %v633_v56 = vld [vmem:[%s1354_s5 + $0x38] sm:$0xff]  ;;  %v632_v59 = vld [vmem:[%s1354_s5 + $0x30] sm:$0xff]  ;;  %s1312_s26 = scalar_lea.vmem %s1358_s9, %s968_s16 }
   0xe   : > { %422 = vmatpush.msra.mxu0 %v352_v1  ;;  %v336_v2 = vld [vmem:[%s1129_s19] sm:$0xff]  ;;  %v337_v3 = vld [vmem:[%s1129_s19 + $0x8] sm:$0xff]  ;;  %v338_v4 = vld [vmem:[%s1129_s19 + $0x10] sm:$0xff]  ;;  %558 = vmatpush.msra.mxu1 %v490_v15 }
   0xf   : > { %971 = vmatmul.msk.f32.vlgmr.msra.gmra.mxu0 %vm358_vm0, %v336_v2  ;;  %v339_v5 = vld [vmem:[%s1129_s19 + $0x18] sm:$0xff]  ;;  %v340_v6 = vld [vmem:[%s1129_s19 + $0x20] sm:$0xff]  ;;  %v341_v7 = vld [vmem:[%s1129_s19 + $0x28] sm:$0xff]  ;;  %695 = vmatpush.msra.mxu2 %v633_v56 }
  0x10   : > { %v342_v8 = vld [vmem:[%s1129_s19 + $0x30] sm:$0xff]  ;;  %v343_v9 = vld [vmem:[%s1129_s19 + $0x38] sm:$0xff]  ;;  %v344_v10 = vld [vmem:[%s1129_s19 + $0x40] sm:$0xff]  ;;  %559 = vmatpush.msra.mxu1 %v489_v17 }
  0x11   : > { %v345_v11 = vld [vmem:[%s1129_s19 + $0x48] sm:$0xff]  ;;  %v346_v12 = vld [vmem:[%s1129_s19 + $0x50] sm:$0xff]  ;;  %v347_v13 = vld [vmem:[%s1129_s19 + $0x58] sm:$0xff]  ;;  %696 = vmatpush.msra.mxu2 %v632_v59 }
  0x12   : > { %v348_v16 = vld [vmem:[%s1129_s19 + $0x60] sm:$0xff]  ;;  %560 = vmatpush.msra.mxu1 %v488_v18  ;;  %v349_v19 = vld [vmem:[%s1129_s19 + $0x68] sm:$0xff]  ;;  %v350_v20 = vld [vmem:[%s1129_s19 + $0x70] sm:$0xff] }
  0x13   : > { %v351_v21 = vld [vmem:[%s1129_s19 + $0x78] sm:$0xff]  ;;  %v631_v61 = vld [vmem:[%s1354_s5 + $0x28] sm:$0xff]  ;;  %v630_v62 = vld [vmem:[%s1354_s5 + $0x20] sm:$0xff] }
  0x14   : > { %697 = vmatpush.msra.mxu2 %v631_v61  ;;  %v629_v63 = vld [vmem:[%s1354_s5 + $0x18] sm:$0xff]  ;;  %v628_v2 = vld [vmem:[%s1354_s5 + $0x10] sm:$0xff]  ;;  %v1239_v15 = vld [vmem:[%s1353_s4] ss:$0 sm:$0xff] }
  0x15   : > { %v770_v56 = vld [vmem:[%s1356_s7 + $0x10] sm:$0xff]  ;;  %v769_v59 = vld [vmem:[%s1356_s7 + $0x8] sm:$0xff]  ;;  %v768_v61 = vld [vmem:[%s1356_s7] sm:$0xff] }
  0x16   : > { %698 = vmatpush.msra.mxu2 %v630_v62 }
  0x17   : > { %972 = vmatmul.msk.f32.gmra.mxu0 %vm358_vm0, %v337_v3 }
  0x18   : > { %699 = vmatpush.msra.mxu2 %v629_v63 }
  0x1a   : > { %700 = vmatpush.msra.mxu2 %v628_v2 }
  0x1f   : > { %973 = vmatmul.msk.f32.gmra.mxu0 %vm358_vm0, %v338_v4  ;;  %v627_v4 = vld [vmem:[%s1354_s5 + $0x8] sm:$0xff] }
  0x20   : > { %701 = vmatpush.msra.mxu2 %v627_v4  ;;  %v1047_v4 = vld [vmem:[%s1355_s6] ss:$0 sm:$0xff] }
  0x27   : > { %974 = vmatmul.msk.f32.gmra.mxu0 %vm358_vm0, %v339_v5  ;;  %v626_v5 = vld [vmem:[%s1354_s5] sm:$0xff] }
  0x28   : > { %702 = vmatpush.msra.mxu2 %v626_v5 }
  0x2f   : > { %975 = vmatmul.msk.f32.gmra.mxu0 %vm358_vm0, %v340_v6 }
  0x37   : > { %976 = vmatmul.msk.f32.gmra.mxu0 %vm358_vm0, %v341_v7 }
  0x3f   : > { %977 = vmatmul.msk.f32.gmra.mxu0 %vm358_vm0, %v342_v8 }
  0x47   : > { %978 = vmatmul.msk.f32.gmra.mxu0 %vm358_vm0, %v343_v9 }
  0x4f   : > { %979 = vmatmul.msk.f32.gmra.mxu0 %vm358_vm0, %v344_v10 }
  0x57   : > { %980 = vmatmul.msk.f32.gmra.mxu0 %vm358_vm0, %v345_v11 }
  0x5f   : > { %981 = vmatmul.msk.f32.gmra.mxu0 %vm358_vm0, %v346_v12 }
  0x67   : > { %982 = vmatmul.msk.f32.gmra.mxu0 %vm358_vm0, %v347_v13 }
  0x6f   : > { %983 = vmatmul.msk.f32.gmra.mxu0 %vm358_vm0, %v348_v16 }
  0x77   : > { %984 = vmatmul.msk.f32.gmra.mxu0 %vm358_vm0, %v349_v19 }
  0x7f   : > { %985 = vmatmul.msk.f32.gmra.mxu0 %vm358_vm0, %v350_v20 }
  0x87   : > { %986 = vmatmul.msk.f32.gmra.mxu0 %vm358_vm0, %v351_v21 }
  0x8c   : > { %v424_v23 = vpop.f32.mrf.mxu0 }
  0x8d   : > { %v425_v24 = vadd.f32 %v1178_v22, %v424_v23 }
  0x8f   : > { %v472_v25 = vmax.f32 %v425_v24, 0.0 }
  0x91   : > { %987 = vmatmul.msk.f32.vlgmr.msra.gmra.mxu1 %vm496_vm1, %v472_v25 }
  0x94   : > { %v427_v26 = vpop.f32.mrf.mxu0 }
  0x95   : > { %v428_v27 = vadd.f32 %v1178_v22, %v427_v26 }
  0x97   : > { %v473_v28 = vmax.f32 %v428_v27, 0.0 }
  0x99   : > { %988 = vmatmul.msk.f32.gmra.mxu1 %vm496_vm1, %v473_v28 }
  0x9c   : > { %v430_v29 = vpop.f32.mrf.mxu0 }
  0x9d   : > { %v431_v30 = vadd.f32 %v1178_v22, %v430_v29 }
  0x9f   : > { %v474_v31 = vmax.f32 %v431_v30, 0.0 }
  0xa1   : > { %989 = vmatmul.msk.f32.gmra.mxu1 %vm496_vm1, %v474_v31 }
  0xa4   : > { %v433_v32 = vpop.f32.mrf.mxu0 }
  0xa5   : > { %v434_v33 = vadd.f32 %v1178_v22, %v433_v32 }
  0xa7   : > { %v475_v34 = vmax.f32 %v434_v33, 0.0 }
  0xa9   : > { %990 = vmatmul.msk.f32.gmra.mxu1 %vm496_vm1, %v475_v34 }
  0xac   : > { %v436_v35 = vpop.f32.mrf.mxu0 }
  0xad   : > { %v437_v36 = vadd.f32 %v1178_v22, %v436_v35 }
  0xaf   : > { %v476_v37 = vmax.f32 %v437_v36, 0.0 }
  0xb1   : > { %991 = vmatmul.msk.f32.gmra.mxu1 %vm496_vm1, %v476_v37 }
  0xb4   : > { %v439_v38 = vpop.f32.mrf.mxu0 }
  0xb5   : > { %v440_v39 = vadd.f32 %v1178_v22, %v439_v38 }
  0xb7   : > { %v477_v40 = vmax.f32 %v440_v39, 0.0 }
  0xb9   : > { %992 = vmatmul.msk.f32.gmra.mxu1 %vm496_vm1, %v477_v40 }
  0xbc   : > { %v442_v41 = vpop.f32.mrf.mxu0 }
  0xbd   : > { %v443_v42 = vadd.f32 %v1178_v22, %v442_v41 }
  0xbf   : > { %v478_v43 = vmax.f32 %v443_v42, 0.0 }
  0xc1   : > { %993 = vmatmul.msk.f32.gmra.mxu1 %vm496_vm1, %v478_v43 }
  0xc4   : > { %v445_v44 = vpop.f32.mrf.mxu0 }
  0xc5   : > { %v446_v45 = vadd.f32 %v1178_v22, %v445_v44 }
  0xc7   : > { %v479_v46 = vmax.f32 %v446_v45, 0.0 }
  0xc9   : > { %994 = vmatmul.msk.f32.gmra.mxu1 %vm496_vm1, %v479_v46 }
  0xcc   : > { %v448_v47 = vpop.f32.mrf.mxu0 }
  0xcd   : > { %v449_v48 = vadd.f32 %v1178_v22, %v448_v47 }
  0xcf   : > { %v480_v49 = vmax.f32 %v449_v48, 0.0 }
  0xd1   : > { %995 = vmatmul.msk.f32.gmra.mxu1 %vm496_vm1, %v480_v49 }
  0xd4   : > { %v451_v50 = vpop.f32.mrf.mxu0 }
  0xd5   : > { %v452_v51 = vadd.f32 %v1178_v22, %v451_v50 }
  0xd7   : > { %v481_v52 = vmax.f32 %v452_v51, 0.0 }
  0xd9   : > { %996 = vmatmul.msk.f32.gmra.mxu1 %vm496_vm1, %v481_v52  ;;  %v771_v52 = vld [vmem:[%s1356_s7 + $0x18] sm:$0xff] }
  0xda   : > { %836 = vmatpush.msra.mxu3 %v771_v52 }
  0xdc   : > { %v454_v53 = vpop.f32.mrf.mxu0  ;;  %837 = vmatpush.msra.mxu3 %v770_v56 }
  0xdd   : > { %v455_v54 = vadd.f32 %v1178_v22, %v454_v53 }
  0xde   : > { %838 = vmatpush.msra.mxu3 %v769_v59 }
  0xdf   : > { %v482_v55 = vmax.f32 %v455_v54, 0.0 }
  0xe0   : > { %839 = vmatpush.msra.mxu3 %v768_v61 }
  0xe1   : > { %997 = vmatmul.msk.f32.gmra.mxu1 %vm496_vm1, %v482_v55 }
  0xe4   : > { %v457_v57 = vpop.f32.mrf.mxu0 }
  0xe5   : > { %v458_v58 = vadd.f32 %v1178_v22, %v457_v57 }
  0xe7   : > { %v483_v60 = vmax.f32 %v458_v58, 0.0 }
  0xe9   : > { %998 = vmatmul.msk.f32.gmra.mxu1 %vm496_vm1, %v483_v60 }
  0xec   : > { %v460_v0 = vpop.f32.mrf.mxu0 }
  0xed   : > { %v461_v1 = vadd.f32 %v1178_v22, %v460_v0 }
  0xef   : > { %v484_v3 = vmax.f32 %v461_v1, 0.0 }
  0xf1   : > { %999 = vmatmul.msk.f32.gmra.mxu1 %vm496_vm1, %v484_v3 }
  0xf4   : > { %v463_v6 = vpop.f32.mrf.mxu0 }
  0xf5   : > { %v464_v7 = vadd.f32 %v1178_v22, %v463_v6 }
  0xf7   : > { %v485_v8 = vmax.f32 %v464_v7, 0.0 }
  0xf9   : > { %1000 = vmatmul.msk.f32.gmra.mxu1 %vm496_vm1, %v485_v8 }
  0xfc   : > { %v466_v9 = vpop.f32.mrf.mxu0 }
  0xfd   : > { %v467_v10 = vadd.f32 %v1178_v22, %v466_v9 }
  0xff   : > { %v486_v11 = vmax.f32 %v467_v10, 0.0 }
 0x101   : > { %1001 = vmatmul.msk.f32.gmra.mxu1 %vm496_vm1, %v486_v11 }
 0x104   : > { %v469_v12 = vpop.f32.mrf.mxu0 }
 0x105   : > { %v470_v13 = vadd.f32 %v1178_v22, %v469_v12 }
 0x107   : > { %v487_v14 = vmax.f32 %v470_v13, 0.0 }
 0x109   : > { %1002 = vmatmul.msk.f32.gmra.mxu1 %vm496_vm1, %v487_v14 }
 0x10e   : > { %v562_v16 = vpop.f32.mrf.mxu1 }
 0x10f   : > { %v563_v17 = vadd.f32 %v1239_v15, %v562_v16 }
 0x111   : > { %v610_v18 = vmax.f32 %v563_v17, 0.0 }
 0x113   : > { %1003 = vmatmul.msk.f32.vlgmr.msra.gmra.mxu2 %vm638_vm2, %v610_v18 }
 0x116   : > { %v565_v19 = vpop.f32.mrf.mxu1 }
 0x117   : > { %v566_v20 = vadd.f32 %v1239_v15, %v565_v19 }
 0x119   : > { %v611_v21 = vmax.f32 %v566_v20, 0.0 }
 0x11b   : > { %1004 = vmatmul.msk.f32.gmra.mxu2 %vm638_vm2, %v611_v21 }
 0x11e   : > { %v568_v22 = vpop.f32.mrf.mxu1 }
 0x11f   : > { %v569_v23 = vadd.f32 %v1239_v15, %v568_v22 }
 0x121   : > { %v612_v24 = vmax.f32 %v569_v23, 0.0 }
 0x123   : > { %1005 = vmatmul.msk.f32.gmra.mxu2 %vm638_vm2, %v612_v24 }
 0x126   : > { %v571_v25 = vpop.f32.mrf.mxu1 }
 0x127   : > { %v572_v26 = vadd.f32 %v1239_v15, %v571_v25 }
 0x129   : > { %v613_v27 = vmax.f32 %v572_v26, 0.0 }
 0x12b   : > { %1006 = vmatmul.msk.f32.gmra.mxu2 %vm638_vm2, %v613_v27 }
 0x12e   : > { %v574_v28 = vpop.f32.mrf.mxu1 }
 0x12f   : > { %v575_v29 = vadd.f32 %v1239_v15, %v574_v28 }
 0x131   : > { %v614_v30 = vmax.f32 %v575_v29, 0.0 }
 0x133   : > { %1007 = vmatmul.msk.f32.gmra.mxu2 %vm638_vm2, %v614_v30 }
 0x136   : > { %v577_v31 = vpop.f32.mrf.mxu1 }
 0x137   : > { %v578_v32 = vadd.f32 %v1239_v15, %v577_v31 }
 0x139   : > { %v615_v33 = vmax.f32 %v578_v32, 0.0 }
 0x13b   : > { %1008 = vmatmul.msk.f32.gmra.mxu2 %vm638_vm2, %v615_v33 }
 0x13e   : > { %v580_v34 = vpop.f32.mrf.mxu1 }
 0x13f   : > { %v581_v35 = vadd.f32 %v1239_v15, %v580_v34 }
 0x141   : > { %v616_v36 = vmax.f32 %v581_v35, 0.0 }
 0x143   : > { %1009 = vmatmul.msk.f32.gmra.mxu2 %vm638_vm2, %v616_v36 }
 0x146   : > { %v583_v37 = vpop.f32.mrf.mxu1 }
 0x147   : > { %v584_v38 = vadd.f32 %v1239_v15, %v583_v37 }
 0x149   : > { %v617_v39 = vmax.f32 %v584_v38, 0.0 }
 0x14b   : > { %1010 = vmatmul.msk.f32.gmra.mxu2 %vm638_vm2, %v617_v39 }
 0x14e   : > { %v586_v40 = vpop.f32.mrf.mxu1 }
 0x14f   : > { %v587_v41 = vadd.f32 %v1239_v15, %v586_v40 }
 0x151   : > { %v618_v42 = vmax.f32 %v587_v41, 0.0 }
 0x153   : > { %1011 = vmatmul.msk.f32.gmra.mxu2 %vm638_vm2, %v618_v42 }
 0x156   : > { %v589_v43 = vpop.f32.mrf.mxu1 }
 0x157   : > { %v590_v44 = vadd.f32 %v1239_v15, %v589_v43 }
 0x159   : > { %v619_v45 = vmax.f32 %v590_v44, 0.0 }
 0x15b   : > { %1012 = vmatmul.msk.f32.gmra.mxu2 %vm638_vm2, %v619_v45 }
 0x15e   : > { %v592_v46 = vpop.f32.mrf.mxu1 }
 0x15f   : > { %v593_v47 = vadd.f32 %v1239_v15, %v592_v46 }
 0x161   : > { %v620_v48 = vmax.f32 %v593_v47, 0.0 }
 0x163   : > { %1013 = vmatmul.msk.f32.gmra.mxu2 %vm638_vm2, %v620_v48 }
 0x166   : > { %v595_v49 = vpop.f32.mrf.mxu1 }
 0x167   : > { %v596_v50 = vadd.f32 %v1239_v15, %v595_v49 }
 0x169   : > { %v621_v51 = vmax.f32 %v596_v50, 0.0 }
 0x16b   : > { %1014 = vmatmul.msk.f32.gmra.mxu2 %vm638_vm2, %v621_v51 }
 0x16e   : > { %v598_v53 = vpop.f32.mrf.mxu1 }
 0x16f   : > { %v599_v54 = vadd.f32 %v1239_v15, %v598_v53  ;;  %v1048_v53 = vld [vmem:[%s1357_s8] ss:$0 sm:$0xff] }
 0x171   : > { %v622_v55 = vmax.f32 %v599_v54, 0.0 }
 0x173   : > { %1015 = vmatmul.msk.f32.gmra.mxu2 %vm638_vm2, %v622_v55 }
 0x176   : > { %v601_v57 = vpop.f32.mrf.mxu1 }
 0x177   : > { %v602_v58 = vadd.f32 %v1239_v15, %v601_v57 }
 0x179   : > { %v623_v60 = vmax.f32 %v602_v58, 0.0 }
 0x17b   : > { %1016 = vmatmul.msk.f32.gmra.mxu2 %vm638_vm2, %v623_v60 }
 0x17e   : > { %v604_v62 = vpop.f32.mrf.mxu1 }
 0x17f   : > { %v605_v63 = vadd.f32 %v1239_v15, %v604_v62 }
 0x181   : > { %v624_v0 = vmax.f32 %v605_v63, 0.0 }
 0x183   : > { %1017 = vmatmul.msk.f32.gmra.mxu2 %vm638_vm2, %v624_v0 }
 0x186   : > { %v607_v1 = vpop.f32.mrf.mxu1 }
 0x187   : > { %v608_v2 = vadd.f32 %v1239_v15, %v607_v1 }
 0x189   : > { %v625_v3 = vmax.f32 %v608_v2, 0.0 }
 0x18b   : > { %1018 = vmatmul.msk.f32.gmra.mxu2 %vm638_vm2, %v625_v3 }
 0x196   : > { %v704_v5 = vpop.f32.mrf.mxu2 }
 0x197   : > { %v705_v6 = vadd.f32 %v1047_v4, %v704_v5 }
 0x199   : > { %v752_v7 = vmax.f32 %v705_v6, 0.0 }
 0x19b   : > { %1019 = vmatmul.msk.f32.vlgmr.msra.gmra.mxu3 %vm496_vm1, %v752_v7 }
 0x19e   : > { %v707_v8 = vpop.f32.mrf.mxu2 }
 0x19f   : > { %v708_v9 = vadd.f32 %v1047_v4, %v707_v8 }
 0x1a1   : > { %v753_v10 = vmax.f32 %v708_v9, 0.0 }
 0x1a3   : > { %1020 = vmatmul.msk.f32.gmra.mxu3 %vm496_vm1, %v753_v10 }
 0x1a6   : > { %v710_v11 = vpop.f32.mrf.mxu2 }
 0x1a7   : > { %v711_v12 = vadd.f32 %v1047_v4, %v710_v11 }
 0x1a9   : > { %v754_v13 = vmax.f32 %v711_v12, 0.0 }
 0x1ab   : > { %1021 = vmatmul.msk.f32.gmra.mxu3 %vm496_vm1, %v754_v13 }
 0x1ae   : > { %v713_v14 = vpop.f32.mrf.mxu2 }
 0x1af   : > { %v714_v15 = vadd.f32 %v1047_v4, %v713_v14 }
 0x1b1   : > { %v755_v16 = vmax.f32 %v714_v15, 0.0 }
 0x1b3   : > { %1022 = vmatmul.msk.f32.gmra.mxu3 %vm496_vm1, %v755_v16 }
 0x1b6   : > { %v716_v17 = vpop.f32.mrf.mxu2 }
 0x1b7   : > { %v717_v18 = vadd.f32 %v1047_v4, %v716_v17 }
 0x1b9   : > { %v756_v19 = vmax.f32 %v717_v18, 0.0 }
 0x1bb   : > { %1023 = vmatmul.msk.f32.gmra.mxu3 %vm496_vm1, %v756_v19 }
 0x1be   : > { %v719_v20 = vpop.f32.mrf.mxu2 }
 0x1bf   : > { %v720_v21 = vadd.f32 %v1047_v4, %v719_v20 }
 0x1c1   : > { %v757_v22 = vmax.f32 %v720_v21, 0.0 }
 0x1c3   : > { %1024 = vmatmul.msk.f32.gmra.mxu3 %vm496_vm1, %v757_v22 }
 0x1c6   : > { %v722_v23 = vpop.f32.mrf.mxu2 }
 0x1c7   : > { %v723_v24 = vadd.f32 %v1047_v4, %v722_v23 }
 0x1c9   : > { %v758_v25 = vmax.f32 %v723_v24, 0.0 }
 0x1cb   : > { %1025 = vmatmul.msk.f32.gmra.mxu3 %vm496_vm1, %v758_v25 }
 0x1ce   : > { %v725_v26 = vpop.f32.mrf.mxu2 }
 0x1cf   : > { %v726_v27 = vadd.f32 %v1047_v4, %v725_v26 }
 0x1d1   : > { %v759_v28 = vmax.f32 %v726_v27, 0.0 }
 0x1d3   : > { %1026 = vmatmul.msk.f32.gmra.mxu3 %vm496_vm1, %v759_v28 }
 0x1d6   : > { %v728_v29 = vpop.f32.mrf.mxu2 }
 0x1d7   : > { %v729_v30 = vadd.f32 %v1047_v4, %v728_v29 }
 0x1d9   : > { %v760_v31 = vmax.f32 %v729_v30, 0.0 }
 0x1db   : > { %1027 = vmatmul.msk.f32.gmra.mxu3 %vm496_vm1, %v760_v31 }
 0x1de   : > { %v731_v32 = vpop.f32.mrf.mxu2 }
 0x1df   : > { %v732_v33 = vadd.f32 %v1047_v4, %v731_v32 }
 0x1e1   : > { %v761_v34 = vmax.f32 %v732_v33, 0.0 }
 0x1e3   : > { %1028 = vmatmul.msk.f32.gmra.mxu3 %vm496_vm1, %v761_v34 }
 0x1e6   : > { %v734_v35 = vpop.f32.mrf.mxu2 }
 0x1e7   : > { %v735_v36 = vadd.f32 %v1047_v4, %v734_v35 }
 0x1e9   : > { %v762_v37 = vmax.f32 %v735_v36, 0.0 }
 0x1eb   : > { %1029 = vmatmul.msk.f32.gmra.mxu3 %vm496_vm1, %v762_v37 }
 0x1ee   : > { %v737_v38 = vpop.f32.mrf.mxu2 }
 0x1ef   : > { %v738_v39 = vadd.f32 %v1047_v4, %v737_v38 }
 0x1f1   : > { %v763_v40 = vmax.f32 %v738_v39, 0.0 }
 0x1f3   : > { %1030 = vmatmul.msk.f32.gmra.mxu3 %vm496_vm1, %v763_v40 }
 0x1f6   : > { %v740_v41 = vpop.f32.mrf.mxu2 }
 0x1f7   : > { %v741_v42 = vadd.f32 %v1047_v4, %v740_v41 }
 0x1f9   : > { %v764_v43 = vmax.f32 %v741_v42, 0.0 }
 0x1fb   : > { %1031 = vmatmul.msk.f32.gmra.mxu3 %vm496_vm1, %v764_v43 }
 0x1fe   : > { %v743_v44 = vpop.f32.mrf.mxu2 }
 0x1ff   : > { %v744_v45 = vadd.f32 %v1047_v4, %v743_v44 }
 0x201   : > { %v765_v46 = vmax.f32 %v744_v45, 0.0 }
 0x203   : > { %1032 = vmatmul.msk.f32.gmra.mxu3 %vm496_vm1, %v765_v46 }
 0x206   : > { %v746_v47 = vpop.f32.mrf.mxu2 }
 0x207   : > { %v747_v48 = vadd.f32 %v1047_v4, %v746_v47 }
 0x209   : > { %v766_v49 = vmax.f32 %v747_v48, 0.0 }
 0x20b   : > { %1033 = vmatmul.msk.f32.gmra.mxu3 %vm496_vm1, %v766_v49 }
 0x20e   : > { %v749_v50 = vpop.f32.mrf.mxu2 }
 0x20f   : > { %v750_v51 = vadd.f32 %v1047_v4, %v749_v50 }
 0x211   : > { %v767_v52 = vmax.f32 %v750_v51, 0.0 }
 0x213   : > { %1034 = vmatmul.msk.f32.gmra.mxu3 %vm496_vm1, %v767_v52 }
 0x21e   : > { %v841_v54 = vpop.f32.mrf.mxu3 }
 0x21f   : > { %v842_v55 = vadd.f32 %v1048_v53, %v841_v54 }
 0x221   : > { %890 = vst.msk [vmem:[%s1312_s26] sm:$0xff] %vm889_vm3, %v842_v55 }
 0x226   : > { %v844_v56 = vpop.f32.mrf.mxu3 }
 0x227   : > { %v845_v57 = vadd.f32 %v1048_v53, %v844_v56 }
 0x229   : > { %891 = vst.msk [vmem:[%s1312_s26 + $0x8] sm:$0xff] %vm889_vm3, %v845_v57 }
 0x22e   : > { %v847_v58 = vpop.f32.mrf.mxu3 }
 0x22f   : > { %v848_v59 = vadd.f32 %v1048_v53, %v847_v58 }
 0x231   : > { %892 = vst.msk [vmem:[%s1312_s26 + $0x10] sm:$0xff] %vm889_vm3, %v848_v59 }
 0x236   : > { %v850_v60 = vpop.f32.mrf.mxu3 }
 0x237   : > { %v851_v61 = vadd.f32 %v1048_v53, %v850_v60 }
 0x239   : > { %893 = vst.msk [vmem:[%s1312_s26 + $0x18] sm:$0xff] %vm889_vm3, %v851_v61 }
 0x23e   : > { %v853_v62 = vpop.f32.mrf.mxu3 }
 0x23f   : > { %v854_v63 = vadd.f32 %v1048_v53, %v853_v62 }
 0x241   : > { %894 = vst.msk [vmem:[%s1312_s26 + $0x20] sm:$0xff] %vm889_vm3, %v854_v63 }
 0x246   : > { %v856_v0 = vpop.f32.mrf.mxu3 }
 0x247   : > { %v857_v1 = vadd.f32 %v1048_v53, %v856_v0 }
 0x249   : > { %895 = vst.msk [vmem:[%s1312_s26 + $0x28] sm:$0xff] %vm889_vm3, %v857_v1 }
 0x24e   : > { %v859_v2 = vpop.f32.mrf.mxu3 }
 0x24f   : > { %v860_v3 = vadd.f32 %v1048_v53, %v859_v2 }
 0x251   : > { %896 = vst.msk [vmem:[%s1312_s26 + $0x30] sm:$0xff] %vm889_vm3, %v860_v3 }
 0x256   : > { %v862_v4 = vpop.f32.mrf.mxu3 }
 0x257   : > { %v863_v5 = vadd.f32 %v1048_v53, %v862_v4 }
 0x259   : > { %897 = vst.msk [vmem:[%s1312_s26 + $0x38] sm:$0xff] %vm889_vm3, %v863_v5 }
 0x25e   : > { %v865_v6 = vpop.f32.mrf.mxu3 }
 0x25f   : > { %v866_v7 = vadd.f32 %v1048_v53, %v865_v6 }
 0x261   : > { %898 = vst.msk [vmem:[%s1312_s26 + $0x40] sm:$0xff] %vm889_vm3, %v866_v7 }
 0x266   : > { %v868_v8 = vpop.f32.mrf.mxu3 }
 0x267   : > { %v869_v9 = vadd.f32 %v1048_v53, %v868_v8 }
 0x269   : > { %899 = vst.msk [vmem:[%s1312_s26 + $0x48] sm:$0xff] %vm889_vm3, %v869_v9 }
 0x26e   : > { %v871_v10 = vpop.f32.mrf.mxu3 }
 0x26f   : > { %v872_v11 = vadd.f32 %v1048_v53, %v871_v10 }
 0x271   : > { %900 = vst.msk [vmem:[%s1312_s26 + $0x50] sm:$0xff] %vm889_vm3, %v872_v11 }
 0x276   : > { %v874_v12 = vpop.f32.mrf.mxu3 }
 0x277   : > { %v875_v13 = vadd.f32 %v1048_v53, %v874_v12 }
 0x279   : > { %901 = vst.msk [vmem:[%s1312_s26 + $0x58] sm:$0xff] %vm889_vm3, %v875_v13 }
 0x27e   : > { %v877_v14 = vpop.f32.mrf.mxu3 }
 0x27f   : > { %v878_v15 = vadd.f32 %v1048_v53, %v877_v14 }
 0x281   : > { %902 = vst.msk [vmem:[%s1312_s26 + $0x60] sm:$0xff] %vm889_vm3, %v878_v15 }
 0x286   : > { %v880_v16 = vpop.f32.mrf.mxu3 }
 0x287   : > { %v881_v17 = vadd.f32 %v1048_v53, %v880_v16 }
 0x289   : > { %903 = vst.msk [vmem:[%s1312_s26 + $0x68] sm:$0xff] %vm889_vm3, %v881_v17 }
 0x28e   : > { %v883_v18 = vpop.f32.mrf.mxu3 }
 0x28f   : > { %v884_v19 = vadd.f32 %v1048_v53, %v883_v18 }
 0x291   : > { %904 = vst.msk [vmem:[%s1312_s26 + $0x70] sm:$0xff] %vm889_vm3, %v884_v19 }
 0x296   : > { %v886_v20 = vpop.f32.mrf.mxu3 }
 0x297   : > { %v887_v21 = vadd.f32 %v1048_v53, %v886_v20 }
 0x299   : > { %905 = vst.msk [vmem:[%s1312_s26 + $0x78] sm:$0xff] %vm889_vm3, %v887_v21 }
 0x29a PF: > { %s19_s30 = sadd.s32 1, %s1055_s30  }
 0x29b   : > { %p16_p4 = scmp.ge.s32.totalorder %s19_s30, 4  }
 0x29d   :  { %18 = sbr.rel (!%p16_p4) target bundleno = 1 (0x1), region = 86 }

</bundles_post_ra>
